<compile_context>
chip_gen: v5e
topology: v5e:2x2
jax: 0.10.0
libtpu: 0.0.40
codegen_flags: <defaults>
</compile_context>

<pallas_src>
import functools

import jax
import jax.numpy as jnp
from jax import lax
from jax.experimental import pallas as pl
from jax.experimental.pallas import tpu as pltpu


def _contrastive_loss_kernel(
    img_ref, txt_ref, out_ref,
    row_es_ref, col_es_ref, slr_ref, slc_ref, dsum_ref, tsum_ref,
    *, inv_temp, c_diag, c_off, n_total, matmul_dtype,
):
    i = pl.program_id(0)          # image (row) block
    j = pl.program_id(1)          # text  (column) block -- innermost
    ni = pl.num_programs(0)
    nj = pl.num_programs(1)

    # ---- zero the scalar accumulators on the very first grid step ----
    @pl.when(jnp.logical_and(i == 0, j == 0))
    def _():
        slr_ref[...] = jnp.zeros_like(slr_ref)
        slc_ref[...] = jnp.zeros_like(slc_ref)
        dsum_ref[...] = jnp.zeros_like(dsum_ref)
        tsum_ref[...] = jnp.zeros_like(tsum_ref)

    # ---- L2-normalize (rsqrt on EUP); fold 1/temperature into the image side ----
    img = img_ref[...].astype(jnp.float32)
    txt = txt_ref[...].astype(jnp.float32)
    eps2 = jnp.float32(1e-24)     # (F.normalize eps = 1e-12) ** 2
    img_scale = lax.rsqrt(jnp.maximum(jnp.sum(img * img, axis=1, keepdims=True), eps2))
    txt_scale = lax.rsqrt(jnp.maximum(jnp.sum(txt * txt, axis=1, keepdims=True), eps2))
    a = (img * (img_scale * jnp.float32(inv_temp))).astype(matmul_dtype)
    b = (txt * txt_scale).astype(matmul_dtype)

    # ---- similarity tile on the MXU: z = (img_n / T) @ txt_n.T  (no transpose materialized) ----
    z = lax.dot_general(a, b, (((1,), (1,)), ((), ())),
                        preferred_element_type=jnp.float32)          # (T, T)

    # ---- shifted exponentials; |z| <= inv_temp so (z - inv_temp) <= ~0 ----
    e = jnp.exp(z - jnp.float32(inv_temp))

    row_part = jnp.sum(e, axis=1, keepdims=True)    # (T, 1)
    col_part = jnp.sum(e, axis=0, keepdims=True)    # (1, T)

    # ---- row-direction exp-sum accumulator (reset at j == 0) ----
    @pl.when(j == 0)
    def _():
        row_es_ref[...] = row_part

    @pl.when(j != 0)
    def _():
        row_es_ref[...] = row_es_ref[...] + row_part

    # ---- column-direction exp-sum accumulator (reset at i == 0) ----
    @pl.when(i == 0)
    def _():
        col_es_ref[j] = col_part

    @pl.when(i != 0)
    def _():
        col_es_ref[j] = col_es_ref[j] + col_part

    # ---- total logits sum every tile; diagonal only on diagonal tiles ----
    tsum_ref[...] = tsum_ref[...] + jnp.sum(z, keepdims=True)

    @pl.when(i == j)
    def _():
        r_iota = lax.broadcasted_iota(jnp.int32, z.shape, 0)
        c_iota = lax.broadcasted_iota(jnp.int32, z.shape, 1)
        dsum_ref[...] = dsum_ref[...] + jnp.sum(
            jnp.where(r_iota == c_iota, z, 0.0), keepdims=True)

    # ---- row block finished: fold log(row exp-sums) into scalar accumulator ----
    @pl.when(j == nj - 1)
    def _():
        slr_ref[...] = slr_ref[...] + jnp.sum(jnp.log(row_es_ref[...]), keepdims=True)

    # ---- column block finished: fold log(col exp-sums) into scalar accumulator ----
    @pl.when(i == ni - 1)
    def _():
        slc_ref[...] = slc_ref[...] + jnp.sum(jnp.log(col_es_ref[j]), keepdims=True)

    # ---- final grid step: assemble both losses and write the two scalars ----
    @pl.when(jnp.logical_and(i == ni - 1, j == nj - 1))
    def _():
        n_f = jnp.float32(n_total)
        shift = n_f * jnp.float32(inv_temp)           # N * B (fixed LSE shift)
        s_row = shift + jnp.sum(slr_ref[...])         # sum_i rowLSE_i
        s_col = shift + jnp.sum(slc_ref[...])         # sum_j colLSE_j
        dsum = jnp.sum(dsum_ref[...])
        tsum = jnp.sum(tsum_ref[...])
        cd = jnp.float32(c_diag)
        co = jnp.float32(c_off)
        out_ref[0] = -(cd * (dsum - s_row) + co * (tsum - n_f * s_row)) / n_f
        out_ref[1] = -(cd * (dsum - s_col) + co * (tsum - n_f * s_col)) / n_f


def _pick_tile(n):
    for t in (256, 128):          # 256-multiples feed v6e/v7x MXU; 128 fine for v5e
        if n % t == 0:
            return t
    return n                      # un-aligned N: single full-size block


def contrastive_loss(logits_per_image, logits_per_text, *, temperature=0.07,
                     smoothing=0.1, matmul_dtype=jnp.float32, tile=None):
    """Returns (loss_img, loss_txt) matching the PyTorch ContrastiveLoss.forward."""
    assert logits_per_image.shape == logits_per_text.shape
    n, d = logits_per_image.shape
    assert n >= 2, "ContrastiveLoss needs N >= 2 (smoothing / (N - 1))"

    t = _pick_tile(n) if tile is None else tile
    assert n % t == 0
    nblk = n // t

    inv_temp = 1.0 / float(temperature)
    c_off = float(smoothing) / (n - 1)
    c_diag = 1.0 - float(smoothing) - c_off

    kernel = functools.partial(
        _contrastive_loss_kernel,
        inv_temp=inv_temp, c_diag=c_diag, c_off=c_off,
        n_total=n, matmul_dtype=matmul_dtype)

    grid_spec = pltpu.PrefetchScalarGridSpec(
        num_scalar_prefetch=0,
        grid=(nblk, nblk),                              # (image blocks, text blocks)
        in_specs=[
            pl.BlockSpec((t, d), lambda i, j: (i, 0)),  # image rows: reused across j
            pl.BlockSpec((t, d), lambda i, j: (j, 0)),  # text rows
        ],
        out_specs=pl.BlockSpec(memory_space=pltpu.MemorySpace.SMEM),
        scratch_shapes=[
            pltpu.VMEM((t, 1), jnp.float32),            # row exp-sums (current row block)
            pltpu.VMEM((nblk, 1, t), jnp.float32),      # col exp-sums (all column blocks)
            pltpu.VMEM((1, 1), jnp.float32),            # sum_i log(row exp-sum)
            pltpu.VMEM((1, 1), jnp.float32),            # sum_j log(col exp-sum)
            pltpu.VMEM((1, 1), jnp.float32),            # sum of diagonal logits
            pltpu.VMEM((1, 1), jnp.float32),            # sum of all logits
        ],
    )

    out = pl.pallas_call(
        kernel,
        out_shape=jax.ShapeDtypeStruct((2,), jnp.float32),
        grid_spec=grid_spec,
        compiler_params=pltpu.CompilerParams(
            dimension_semantics=("arbitrary", "arbitrary")),
        cost_estimate=pl.CostEstimate(
            flops=2 * n * n * d + 8 * n * d,
            transcendentals=n * n + 2 * n,
            bytes_accessed=2 * n * d * logits_per_image.dtype.itemsize + 8),
    )(logits_per_image, logits_per_text)
    return out[0], out[1]


def _reference(img, txt, temperature=0.07, smoothing=0.1):
    # Pure-JAX mirror of the PyTorch module for sanity checking.
    eps = 1e-12
    img_n = img / jnp.maximum(jnp.linalg.norm(img, axis=1, keepdims=True), eps)
    txt_n = txt / jnp.maximum(jnp.linalg.norm(txt, axis=1, keepdims=True), eps)
    logits = img_n @ txt_n.T / temperature
    n = logits.shape[0]
    smoothed = jnp.full((n, n), smoothing / (n - 1))
    smoothed = smoothed.at[jnp.arange(n), jnp.arange(n)].set(1.0 - smoothing)
    lp_img = jax.nn.log_softmax(logits, axis=1)
    lp_txt = jax.nn.log_softmax(logits.T, axis=1)
    loss_img = -(smoothed * lp_img).sum(axis=1).mean()
    loss_txt = -(smoothed * lp_txt).sum(axis=1).mean()
    return loss_img, loss_txt


if __name__ == "__main__":
    key = jax.random.PRNGKey(0)
    k1, k2, k3, k4 = jax.random.split(key, 4)

    # Small test: single-tile path (N=8, D=32), f32 matmul.
    N, D = 8, 32
    img = jax.random.normal(k1, (N, D), dtype=jnp.float32)
    txt = jax.random.normal(k2, (N, D), dtype=jnp.float32)

    loss_img, loss_txt = contrastive_loss(img, txt)
    jax.block_until_ready((loss_img, loss_txt))
    ref_img, ref_txt = _reference(img, txt)
    assert jnp.allclose(loss_img, ref_img, atol=1e-4, rtol=1e-4), (loss_img, ref_img)
    assert jnp.allclose(loss_txt, ref_txt, atol=1e-4, rtol=1e-4), (loss_txt, ref_txt)

    # bf16-MXU path on the same inputs (f32 accumulation), looser tolerance.
    loss_img_bf, loss_txt_bf = contrastive_loss(img, txt, matmul_dtype=jnp.bfloat16)
    jax.block_until_ready((loss_img_bf, loss_txt_bf))
    assert jnp.allclose(loss_img_bf, ref_img, atol=1e-1, rtol=5e-2)
    assert jnp.allclose(loss_txt_bf, ref_txt, atol=1e-1, rtol=5e-2)

    # Tiled path: N=256 with tile=128 -> 2x2 grid exercises all accumulators.
    N2, D2 = 256, 64
    img2 = jax.random.normal(k3, (N2, D2), dtype=jnp.float32)
    txt2 = jax.random.normal(k4, (N2, D2), dtype=jnp.float32)
    loss_img2, loss_txt2 = contrastive_loss(img2, txt2, tile=128)
    jax.block_until_ready((loss_img2, loss_txt2))
    ref_img2, ref_txt2 = _reference(img2, txt2)
    assert jnp.allclose(loss_img2, ref_img2, atol=1e-4, rtol=1e-4), (loss_img2, ref_img2)
    assert jnp.allclose(loss_txt2, ref_txt2, atol=1e-4, rtol=1e-4), (loss_txt2, ref_txt2)

    print("KERNEL_OK")
</pallas_src>

<mosaic_0001>
module attributes {stable_mosaic.version = 11 : i64} {
  func.func @_contrastive_loss_kernel(%arg0: i32, %arg1: i32, %arg2: memref<8x32xf32, #tpu.memory_space<vmem>>, %arg3: memref<8x32xf32, #tpu.memory_space<vmem>>, %arg4: memref<2xf32, #tpu.memory_space<smem>>, %arg5: memref<8x1xf32, #tpu.memory_space<vmem>>, %arg6: memref<1x1x8xf32, #tpu.memory_space<vmem>>, %arg7: memref<1x1xf32, #tpu.memory_space<vmem>>, %arg8: memref<1x1xf32, #tpu.memory_space<vmem>>, %arg9: memref<1x1xf32, #tpu.memory_space<vmem>>, %arg10: memref<1x1xf32, #tpu.memory_space<vmem>>) attributes {dimension_semantics = [#tpu.dimension_semantics<arbitrary>, #tpu.dimension_semantics<arbitrary>], iteration_bounds = array<i64: 1, 1>, scalar_prefetch = 0 : i64, scratch_operands = 6 : i64, tpu.core_type = #tpu.core_type<tc>, window_params = [{transform_indices = @transform_0, window_bounds = array<i64: 8, 32>}, {transform_indices = @transform_1, window_bounds = array<i64: 8, 32>}, {transform_indices = @transform_2, window_bounds = array<i64: 2>}]} {
    %c0_i32 = arith.constant 0 : i32
    %0 = arith.cmpi eq, %arg0, %c0_i32 : i32
    %c0_i32_0 = arith.constant 0 : i32
    %1 = arith.cmpi eq, %arg1, %c0_i32_0 : i32
    %2 = arith.andi %0, %1 : i1
    %3 = arith.extui %2 : i1 to i32
    %c0_i32_1 = arith.constant 0 : i32
    %4 = arith.cmpi ne, %3, %c0_i32_1 : i32
    scf.if %4 {
      %cst_34 = arith.constant 0.000000e+00 : f32
      %67 = vector.broadcast %cst_34 : f32 to vector<1x1xf32>
      %c0_35 = arith.constant 0 : index
      %c0_36 = arith.constant 0 : index
      %68 = vector.load %arg7[%c0_35, %c0_36] : memref<1x1xf32, #tpu.memory_space<vmem>>, vector<1x1xf32>
      tpu.vector_store %arg7[%c0_35, %c0_36], %67 {strides = array<i32>} : memref<1x1xf32, #tpu.memory_space<vmem>>, vector<1x1xf32>,
      %cst_37 = arith.constant 0.000000e+00 : f32
      %69 = vector.broadcast %cst_37 : f32 to vector<1x1xf32>
      %c0_38 = arith.constant 0 : index
      %c0_39 = arith.constant 0 : index
      %70 = vector.load %arg8[%c0_38, %c0_39] : memref<1x1xf32, #tpu.memory_space<vmem>>, vector<1x1xf32>
      tpu.vector_store %arg8[%c0_38, %c0_39], %69 {strides = array<i32>} : memref<1x1xf32, #tpu.memory_space<vmem>>, vector<1x1xf32>,
      %cst_40 = arith.constant 0.000000e+00 : f32
      %71 = vector.broadcast %cst_40 : f32 to vector<1x1xf32>
      %c0_41 = arith.constant 0 : index
      %c0_42 = arith.constant 0 : index
      %72 = vector.load %arg9[%c0_41, %c0_42] : memref<1x1xf32, #tpu.memory_space<vmem>>, vector<1x1xf32>
      tpu.vector_store %arg9[%c0_41, %c0_42], %71 {strides = array<i32>} : memref<1x1xf32, #tpu.memory_space<vmem>>, vector<1x1xf32>,
      %cst_43 = arith.constant 0.000000e+00 : f32
      %73 = vector.broadcast %cst_43 : f32 to vector<1x1xf32>
      %c0_44 = arith.constant 0 : index
      %c0_45 = arith.constant 0 : index
      %74 = vector.load %arg10[%c0_44, %c0_45] : memref<1x1xf32, #tpu.memory_space<vmem>>, vector<1x1xf32>
      tpu.vector_store %arg10[%c0_44, %c0_45], %73 {strides = array<i32>} : memref<1x1xf32, #tpu.memory_space<vmem>>, vector<1x1xf32>,
    } else {
    }
    %c0 = arith.constant 0 : index
    %c0_2 = arith.constant 0 : index
    %5 = vector.load %arg2[%c0, %c0_2] : memref<8x32xf32, #tpu.memory_space<vmem>>, vector<8x32xf32>
    %c0_3 = arith.constant 0 : index
    %c0_4 = arith.constant 0 : index
    %6 = vector.load %arg3[%c0_3, %c0_4] : memref<8x32xf32, #tpu.memory_space<vmem>>, vector<8x32xf32>
    %7 = arith.mulf %5, %5 : vector<8x32xf32>
    %cst = arith.constant dense<0.000000e+00> : vector<8xf32>
    %8 = vector.multi_reduction <add>, %7, %cst [1] : vector<8x32xf32> to vector<8xf32>
    %9 = vector.shape_cast %8 : vector<8xf32> to vector<8x1xf32>
    %cst_5 = arith.constant 1.000000e-24 : f32
    %10 = vector.broadcast %cst_5 : f32 to vector<8x1xf32>
    %11 = arith.maximumf %9, %10 : vector<8x1xf32>
    %12 = math.rsqrt %11 : vector<8x1xf32>
    %13 = arith.mulf %6, %6 : vector<8x32xf32>
    %cst_6 = arith.constant dense<0.000000e+00> : vector<8xf32>
    %14 = vector.multi_reduction <add>, %13, %cst_6 [1] : vector<8x32xf32> to vector<8xf32>
    %15 = vector.shape_cast %14 : vector<8xf32> to vector<8x1xf32>
    %cst_7 = arith.constant 1.000000e-24 : f32
    %16 = vector.broadcast %cst_7 : f32 to vector<8x1xf32>
    %17 = arith.maximumf %15, %16 : vector<8x1xf32>
    %18 = math.rsqrt %17 : vector<8x1xf32>
    %cst_8 = arith.constant 14.2857141 : f32
    %19 = vector.broadcast %cst_8 : f32 to vector<8x1xf32>
    %20 = arith.mulf %12, %19 : vector<8x1xf32>
    %21 = vector.broadcast %20 : vector<8x1xf32> to vector<8x32xf32>
    %22 = arith.mulf %5, %21 : vector<8x32xf32>
    %23 = vector.broadcast %18 : vector<8x1xf32> to vector<8x32xf32>
    %24 = arith.mulf %6, %23 : vector<8x32xf32>
    %cst_9 = arith.constant dense<0.000000e+00> : vector<8x8xf32>
    %25 = tpu.matmul %22, %24, %cst_9 {dimension_numbers = #tpu.dot_dimension_numbers<[1], [1], [0], [0], [0, 0, 1, 0], [], []>} : vector<8x32xf32>, vector<8x32xf32>, vector<8x8xf32> -> vector<8x8xf32>
    %cst_10 = arith.constant 14.2857141 : f32
    %26 = vector.broadcast %cst_10 : f32 to vector<8x8xf32>
    %27 = arith.subf %25, %26 : vector<8x8xf32>
    %28 = math.exp %27 : vector<8x8xf32>
    %cst_11 = arith.constant dense<0.000000e+00> : vector<8xf32>
    %29 = vector.multi_reduction <add>, %28, %cst_11 [1] : vector<8x8xf32> to vector<8xf32>
    %30 = vector.shape_cast %29 : vector<8xf32> to vector<8x1xf32>
    %cst_12 = arith.constant dense<0.000000e+00> : vector<8xf32>
    %31 = vector.multi_reduction <add>, %28, %cst_12 [0] : vector<8x8xf32> to vector<8xf32>
    %32 = vector.shape_cast %31 : vector<8xf32> to vector<1x8xf32>
    %c0_i32_13 = arith.constant 0 : i32
    %33 = arith.cmpi eq, %arg1, %c0_i32_13 : i32
    %34 = arith.extui %33 : i1 to i32
    %c0_i32_14 = arith.constant 0 : i32
    %35 = arith.cmpi ne, %34, %c0_i32_14 : i32
    scf.if %35 {
      %c0_34 = arith.constant 0 : index
      %c0_35 = arith.constant 0 : index
      %67 = vector.load %arg5[%c0_34, %c0_35] : memref<8x1xf32, #tpu.memory_space<vmem>>, vector<8x1xf32>
      tpu.vector_store %arg5[%c0_34, %c0_35], %30 {strides = array<i32>} : memref<8x1xf32, #tpu.memory_space<vmem>>, vector<8x1xf32>,
    } else {
    }
    %c0_i32_15 = arith.constant 0 : i32
    %36 = arith.cmpi ne, %arg1, %c0_i32_15 : i32
    %37 = arith.extui %36 : i1 to i32
    %c0_i32_16 = arith.constant 0 : i32
    %38 = arith.cmpi ne, %37, %c0_i32_16 : i32
    scf.if %38 {
      %c0_34 = arith.constant 0 : index
      %c0_35 = arith.constant 0 : index
      %67 = vector.load %arg5[%c0_34, %c0_35] : memref<8x1xf32, #tpu.memory_space<vmem>>, vector<8x1xf32>
      %68 = arith.addf %67, %30 : vector<8x1xf32>
      %c0_36 = arith.constant 0 : index
      %c0_37 = arith.constant 0 : index
      %69 = vector.load %arg5[%c0_36, %c0_37] : memref<8x1xf32, #tpu.memory_space<vmem>>, vector<8x1xf32>
      tpu.vector_store %arg5[%c0_36, %c0_37], %68 {strides = array<i32>} : memref<8x1xf32, #tpu.memory_space<vmem>>, vector<8x1xf32>,
    } else {
    }
    %c0_i32_17 = arith.constant 0 : i32
    %39 = arith.cmpi eq, %arg0, %c0_i32_17 : i32
    %40 = arith.extui %39 : i1 to i32
    %c0_i32_18 = arith.constant 0 : i32
    %41 = arith.cmpi ne, %40, %c0_i32_18 : i32
    scf.if %41 {
      %67 = arith.index_cast %arg1 : i32 to index
      %c0_34 = arith.constant 0 : index
      %c0_35 = arith.constant 0 : index
      %68 = vector.load %arg6[%67, %c0_34, %c0_35] : memref<1x1x8xf32, #tpu.memory_space<vmem>>, vector<1x1x8xf32>
      %69 = vector.shape_cast %68 : vector<1x1x8xf32> to vector<1x8xf32>
      %70 = vector.shape_cast %32 : vector<1x8xf32> to vector<1x1x8xf32>
      tpu.vector_store %arg6[%67, %c0_34, %c0_35], %70 {strides = array<i32>} : memref<1x1x8xf32, #tpu.memory_space<vmem>>, vector<1x1x8xf32>,
    } else {
    }
    %c0_i32_19 = arith.constant 0 : i32
    %42 = arith.cmpi ne, %arg0, %c0_i32_19 : i32
    %43 = arith.extui %42 : i1 to i32
    %c0_i32_20 = arith.constant 0 : i32
    %44 = arith.cmpi ne, %43, %c0_i32_20 : i32
    scf.if %44 {
      %67 = arith.index_cast %arg1 : i32 to index
      %c0_34 = arith.constant 0 : index
      %c0_35 = arith.constant 0 : index
      %68 = vector.load %arg6[%67, %c0_34, %c0_35] : memref<1x1x8xf32, #tpu.memory_space<vmem>>, vector<1x1x8xf32>
      %69 = vector.shape_cast %68 : vector<1x1x8xf32> to vector<1x8xf32>
      %70 = arith.addf %69, %32 : vector<1x8xf32>
      %71 = arith.index_cast %arg1 : i32 to index
      %c0_36 = arith.constant 0 : index
      %c0_37 = arith.constant 0 : index
      %72 = vector.load %arg6[%71, %c0_36, %c0_37] : memref<1x1x8xf32, #tpu.memory_space<vmem>>, vector<1x1x8xf32>
      %73 = vector.shape_cast %72 : vector<1x1x8xf32> to vector<1x8xf32>
      %74 = vector.shape_cast %70 : vector<1x8xf32> to vector<1x1x8xf32>
      tpu.vector_store %arg6[%71, %c0_36, %c0_37], %74 {strides = array<i32>} : memref<1x1x8xf32, #tpu.memory_space<vmem>>, vector<1x1x8xf32>,
    } else {
    }
    %c0_21 = arith.constant 0 : index
    %c0_22 = arith.constant 0 : index
    %45 = vector.load %arg10[%c0_21, %c0_22] : memref<1x1xf32, #tpu.memory_space<vmem>>, vector<1x1xf32>
    %46 = vector.shape_cast %25 : vector<8x8xf32> to vector<1x8x8xf32>
    %cst_23 = arith.constant dense<0.000000e+00> : vector<1xf32>
    %47 = vector.multi_reduction <add>, %46, %cst_23 [1, 2] : vector<1x8x8xf32> to vector<1xf32>
    %48 = vector.shape_cast %47 : vector<1xf32> to vector<1x1x1xf32>
    %49 = vector.extract %48[0, 0, 0] : f32 from vector<1x1x1xf32>
    %50 = vector.broadcast %49 : f32 to vector<1x1xf32>
    %51 = arith.addf %45, %50 : vector<1x1xf32>
    %c0_24 = arith.constant 0 : index
    %c0_25 = arith.constant 0 : index
    %52 = vector.load %arg10[%c0_24, %c0_25] : memref<1x1xf32, #tpu.memory_space<vmem>>, vector<1x1xf32>
    tpu.vector_store %arg10[%c0_24, %c0_25], %51 {strides = array<i32>} : memref<1x1xf32, #tpu.memory_space<vmem>>, vector<1x1xf32>,
    %53 = arith.cmpi eq, %arg0, %arg1 : i32
    %54 = arith.extui %53 : i1 to i32
    %c0_i32_26 = arith.constant 0 : i32
    %55 = arith.cmpi ne, %54, %c0_i32_26 : i32
    scf.if %55 {
      %67 = tpu.iota {dimensions = array<i32: 0>} : vector<8x8xi32>
      %68 = tpu.iota {dimensions = array<i32: 1>} : vector<8x8xi32>
      %c0_34 = arith.constant 0 : index
      %c0_35 = arith.constant 0 : index
      %69 = vector.load %arg9[%c0_34, %c0_35] : memref<1x1xf32, #tpu.memory_space<vmem>>, vector<1x1xf32>
      %70 = arith.cmpi eq, %67, %68 : vector<8x8xi32>
      %cst_36 = arith.constant 0.000000e+00 : f32
      %71 = vector.broadcast %cst_36 : f32 to vector<8x8xf32>
      %72 = arith.select %70, %25, %71 : vector<8x8xi1>, vector<8x8xf32>
      %73 = vector.shape_cast %72 : vector<8x8xf32> to vector<1x8x8xf32>
      %cst_37 = arith.constant dense<0.000000e+00> : vector<1xf32>
      %74 = vector.multi_reduction <add>, %73, %cst_37 [1, 2] : vector<1x8x8xf32> to vector<1xf32>
      %75 = vector.shape_cast %74 : vector<1xf32> to vector<1x1x1xf32>
      %76 = vector.extract %75[0, 0, 0] : f32 from vector<1x1x1xf32>
      %77 = vector.broadcast %76 : f32 to vector<1x1xf32>
      %78 = arith.addf %69, %77 : vector<1x1xf32>
      %c0_38 = arith.constant 0 : index
      %c0_39 = arith.constant 0 : index
      %79 = vector.load %arg9[%c0_38, %c0_39] : memref<1x1xf32, #tpu.memory_space<vmem>>, vector<1x1xf32>
      tpu.vector_store %arg9[%c0_38, %c0_39], %78 {strides = array<i32>} : memref<1x1xf32, #tpu.memory_space<vmem>>, vector<1x1xf32>,
    } else {
    }
    %c0_i32_27 = arith.constant 0 : i32
    %56 = arith.cmpi eq, %arg1, %c0_i32_27 : i32
    %57 = arith.extui %56 : i1 to i32
    %c0_i32_28 = arith.constant 0 : i32
    %58 = arith.cmpi ne, %57, %c0_i32_28 : i32
    scf.if %58 {
      %c0_34 = arith.constant 0 : index
      %c0_35 = arith.constant 0 : index
      %67 = vector.load %arg7[%c0_34, %c0_35] : memref<1x1xf32, #tpu.memory_space<vmem>>, vector<1x1xf32>
      %c0_36 = arith.constant 0 : index
      %c0_37 = arith.constant 0 : index
      %68 = vector.load %arg5[%c0_36, %c0_37] : memref<8x1xf32, #tpu.memory_space<vmem>>, vector<8x1xf32>
      %69 = math.log %68 : vector<8x1xf32>
      %70 = vector.shape_cast %69 : vector<8x1xf32> to vector<1x8x1xf32>
      %cst_38 = arith.constant dense<0.000000e+00> : vector<1xf32>
      %71 = vector.multi_reduction <add>, %70, %cst_38 [1, 2] : vector<1x8x1xf32> to vector<1xf32>
      %72 = vector.shape_cast %71 : vector<1xf32> to vector<1x1x1xf32>
      %73 = vector.extract %72[0, 0, 0] : f32 from vector<1x1x1xf32>
      %74 = vector.broadcast %73 : f32 to vector<1x1xf32>
      %75 = arith.addf %67, %74 : vector<1x1xf32>
      %c0_39 = arith.constant 0 : index
      %c0_40 = arith.constant 0 : index
      %76 = vector.load %arg7[%c0_39, %c0_40] : memref<1x1xf32, #tpu.memory_space<vmem>>, vector<1x1xf32>
      tpu.vector_store %arg7[%c0_39, %c0_40], %75 {strides = array<i32>} : memref<1x1xf32, #tpu.memory_space<vmem>>, vector<1x1xf32>,
    } else {
    }
    %c0_i32_29 = arith.constant 0 : i32
    %59 = arith.cmpi eq, %arg0, %c0_i32_29 : i32
    %60 = arith.extui %59 : i1 to i32
    %c0_i32_30 = arith.constant 0 : i32
    %61 = arith.cmpi ne, %60, %c0_i32_30 : i32
    scf.if %61 {
      %c0_34 = arith.constant 0 : index
      %c0_35 = arith.constant 0 : index
      %67 = vector.load %arg8[%c0_34, %c0_35] : memref<1x1xf32, #tpu.memory_space<vmem>>, vector<1x1xf32>
      %68 = arith.index_cast %arg1 : i32 to index
      %c0_36 = arith.constant 0 : index
      %c0_37 = arith.constant 0 : index
      %69 = vector.load %arg6[%68, %c0_36, %c0_37] : memref<1x1x8xf32, #tpu.memory_space<vmem>>, vector<1x1x8xf32>
      %70 = vector.shape_cast %69 : vector<1x1x8xf32> to vector<1x8xf32>
      %71 = math.log %70 : vector<1x8xf32>
      %72 = vector.shape_cast %71 : vector<1x8xf32> to vector<1x1x8xf32>
      %cst_38 = arith.constant dense<0.000000e+00> : vector<1xf32>
      %73 = vector.multi_reduction <add>, %72, %cst_38 [1, 2] : vector<1x1x8xf32> to vector<1xf32>
      %74 = vector.shape_cast %73 : vector<1xf32> to vector<1x1x1xf32>
      %75 = vector.extract %74[0, 0, 0] : f32 from vector<1x1x1xf32>
      %76 = vector.broadcast %75 : f32 to vector<1x1xf32>
      %77 = arith.addf %67, %76 : vector<1x1xf32>
      %c0_39 = arith.constant 0 : index
      %c0_40 = arith.constant 0 : index
      %78 = vector.load %arg8[%c0_39, %c0_40] : memref<1x1xf32, #tpu.memory_space<vmem>>, vector<1x1xf32>
      tpu.vector_store %arg8[%c0_39, %c0_40], %77 {strides = array<i32>} : memref<1x1xf32, #tpu.memory_space<vmem>>, vector<1x1xf32>,
    } else {
    }
    %c0_i32_31 = arith.constant 0 : i32
    %62 = arith.cmpi eq, %arg0, %c0_i32_31 : i32
    %c0_i32_32 = arith.constant 0 : i32
    %63 = arith.cmpi eq, %arg1, %c0_i32_32 : i32
    %64 = arith.andi %62, %63 : i1
    %65 = arith.extui %64 : i1 to i32
    %c0_i32_33 = arith.constant 0 : i32
    %66 = arith.cmpi ne, %65, %c0_i32_33 : i32
    scf.if %66 {
      %cst_34 = arith.constant 8.000000e+00 : f32
      %cst_35 = arith.constant 14.2857141 : f32
      %67 = arith.mulf %cst_34, %cst_35 : f32
      %c0_36 = arith.constant 0 : index
      %c0_37 = arith.constant 0 : index
      %68 = vector.load %arg7[%c0_36, %c0_37] : memref<1x1xf32, #tpu.memory_space<vmem>>, vector<1x1xf32>
      %69 = vector.shape_cast %68 : vector<1x1xf32> to vector<1x1x1xf32>
      %cst_38 = arith.constant dense<0.000000e+00> : vector<1xf32>
      %70 = vector.multi_reduction <add>, %69, %cst_38 [1, 2] : vector<1x1x1xf32> to vector<1xf32>
      %71 = vector.shape_cast %70 : vector<1xf32> to vector<1x1x1xf32>
      %72 = vector.extract %71[0, 0, 0] : f32 from vector<1x1x1xf32>
      %73 = arith.addf %67, %72 : f32
      %c0_39 = arith.constant 0 : index
      %c0_40 = arith.constant 0 : index
      %74 = vector.load %arg8[%c0_39, %c0_40] : memref<1x1xf32, #tpu.memory_space<vmem>>, vector<1x1xf32>
      %75 = vector.shape_cast %74 : vector<1x1xf32> to vector<1x1x1xf32>
      %cst_41 = arith.constant dense<0.000000e+00> : vector<1xf32>
      %76 = vector.multi_reduction <add>, %75, %cst_41 [1, 2] : vector<1x1x1xf32> to vector<1xf32>
      %77 = vector.shape_cast %76 : vector<1xf32> to vector<1x1x1xf32>
      %78 = vector.extract %77[0, 0, 0] : f32 from vector<1x1x1xf32>
      %79 = arith.addf %67, %78 : f32
      %c0_42 = arith.constant 0 : index
      %c0_43 = arith.constant 0 : index
      %80 = vector.load %arg9[%c0_42, %c0_43] : memref<1x1xf32, #tpu.memory_space<vmem>>, vector<1x1xf32>
      %81 = vector.shape_cast %80 : vector<1x1xf32> to vector<1x1x1xf32>
      %cst_44 = arith.constant dense<0.000000e+00> : vector<1xf32>
      %82 = vector.multi_reduction <add>, %81, %cst_44 [1, 2] : vector<1x1x1xf32> to vector<1xf32>
      %83 = vector.shape_cast %82 : vector<1xf32> to vector<1x1x1xf32>
      %84 = vector.extract %83[0, 0, 0] : f32 from vector<1x1x1xf32>
      %c0_45 = arith.constant 0 : index
      %c0_46 = arith.constant 0 : index
      %85 = vector.load %arg10[%c0_45, %c0_46] : memref<1x1xf32, #tpu.memory_space<vmem>>, vector<1x1xf32>
      %86 = vector.shape_cast %85 : vector<1x1xf32> to vector<1x1x1xf32>
      %cst_47 = arith.constant dense<0.000000e+00> : vector<1xf32>
      %87 = vector.multi_reduction <add>, %86, %cst_47 [1, 2] : vector<1x1x1xf32> to vector<1xf32>
      %88 = vector.shape_cast %87 : vector<1xf32> to vector<1x1x1xf32>
      %89 = vector.extract %88[0, 0, 0] : f32 from vector<1x1x1xf32>
      %90 = arith.subf %84, %73 : f32
      %cst_48 = arith.constant 0.885714293 : f32
      %91 = arith.mulf %cst_48, %90 : f32
      %cst_49 = arith.constant 8.000000e+00 : f32
      %92 = arith.mulf %cst_49, %73 : f32
      %93 = arith.subf %89, %92 : f32
      %cst_50 = arith.constant 0.0142857144 : f32
      %94 = arith.mulf %cst_50, %93 : f32
      %95 = arith.addf %91, %94 : f32
      %cst_51 = arith.constant 0.000000e+00 : f32
      %96 = arith.subf %cst_51, %95 : f32
      %cst_52 = arith.constant 8.000000e+00 : f32
      %97 = arith.divf %96, %cst_52 : f32
      %c0_53 = arith.constant 0 : index
      %98 = memref.load %arg4[%c0_53] : memref<2xf32, #tpu.memory_space<smem>>
      memref.store %97, %arg4[%c0_53] : memref<2xf32, #tpu.memory_space<smem>>
      %99 = arith.subf %84, %79 : f32
      %cst_54 = arith.constant 0.885714293 : f32
      %100 = arith.mulf %cst_54, %99 : f32
      %cst_55 = arith.constant 8.000000e+00 : f32
      %101 = arith.mulf %cst_55, %79 : f32
      %102 = arith.subf %89, %101 : f32
      %cst_56 = arith.constant 0.0142857144 : f32
      %103 = arith.mulf %cst_56, %102 : f32
      %104 = arith.addf %100, %103 : f32
      %cst_57 = arith.constant 0.000000e+00 : f32
      %105 = arith.subf %cst_57, %104 : f32
      %cst_58 = arith.constant 8.000000e+00 : f32
      %106 = arith.divf %105, %cst_58 : f32
      %c1 = arith.constant 1 : index
      %107 = memref.load %arg4[%c1] : memref<2xf32, #tpu.memory_space<smem>>
      memref.store %106, %arg4[%c1] : memref<2xf32, #tpu.memory_space<smem>>
    } else {
    }
    return
  }
  func.func @transform_0(%arg0: i32, %arg1: i32) -> (i32, i32) {
    %c0_i32 = arith.constant 0 : i32
    %c0_i32_0 = arith.constant 0 : i32
    return %arg0, %c0_i32 : i32, i32
  }
  func.func @transform_1(%arg0: i32, %arg1: i32) -> (i32, i32) {
    %c0_i32 = arith.constant 0 : i32
    %c0_i32_0 = arith.constant 0 : i32
    return %arg1, %c0_i32 : i32, i32
  }
  func.func @transform_2(%arg0: i32, %arg1: i32) -> i32 {
    %c0_i32 = arith.constant 0 : i32
    %c0_i32_0 = arith.constant 0 : i32
    return %c0_i32 : i32
  }
}

</mosaic_0001>

<bundles_post_ra>
// kernel: tpu_custom_call.1
= control target key start
LH: loop header
LB: loop body
LE: loop exit
PB: predicated region body
PF: predicated region fallthrough
CT: control target
= control target key end

     0   :  { %7 = vsyncpa [#allocation9], 0  ;;  %s449_s0 = inlined_call_operand.hbm [shape: f32[8,32], index: 0, kind: input, shape index: {}]   ;;  %s450_s1 = inlined_call_operand.hbm [shape: f32[8,32], index: 1, kind: input, shape index: {}]   ;;  %s451_s2 = inlined_call_operand.hbm [shape: f32[2], index: 2, kind: output, shape index: {}]  }
   0x1   :  { %8 = vsyncpa [#allocation12], 0 }
   0x2   :  { %9 = vsyncpa [#allocation10], 0  ;;  %s15_s11 = sshll.u32 %s449_s0, 4  ;;  %s406_s12 = smov [#allocation8]   ;;  %s16_s11 = int_to_ptr.hbm [resolvable:$true] %s15_s11 }
   0x3   :  { %s17_s13 = sshll.u32 %s406_s12, 4  ;;  %s26_s16 = sshll.u32 %s450_s1, 4  ;;  %s18_s13 = int_to_ptr.vmem [resolvable:$true] %s17_s13  ;;  %s27_s16 = int_to_ptr.hbm [resolvable:$true] %s26_s16 }
   0x4   :  { %20 = dma.hbm_to_vmem [thread:$0]  %s16_s11, 128, %s18_s13, [#allocation9]  }
   0x5   :  { %s407_s17 = smov [#allocation11]  }
   0x6   :  { %s28_s18 = sshll.u32 %s407_s17, 4  ;;  %s29_s18 = int_to_ptr.vmem [resolvable:$true] %s28_s18 }
   0x7   :  { %31 = dma.hbm_to_vmem [thread:$0]  %s27_s16, 128, %s29_s18, [#allocation12]  }
   0x8   :  { %400 = dma.done.wait [#allocation9], 128  }
   0x9   :  { %401 = vsyncadd [#allocation9], 4294967168 }
   0xa   :  { %402 = dma.done.wait [#allocation12], 128  }
   0xb   :  { %403 = vsyncadd [#allocation12], 4294967168  ;;  %v52_v0 = vld [vmem:[#allocation11] sm:$0xff]  ;;  %vm54_vm0 = vcmask 261120   ;;  %v51_v2 = vld [vmem:[#allocation8] sm:$0xff]  ;;  %v171_v27 = vlaneseq  ;;  %vm116_vm8 = vcmask 64512  }
   0xc   :  { %v69_v1 = vmul.f32 %v52_v0, %v52_v0  ;;  %v53_v4 = vmul.f32 %v51_v2, %v51_v2  ;;  %vm142_vm9 = vcmask 57344   ;;  %vm129_vm10 = vcmask 7168   ;;  %s290_s15 = sshll.u32 %s451_s2, 4  ;;  %s291_s15 = int_to_ptr.hbm [resolvable:$true] %s290_s15 }
   0xd   :  { %v172_v28 = vshrl.u32 %v171_v27, 7  ;;  %v174_v29 = vand.u32 127, %v171_v27  ;;  %vm46_vm11 = vcmask 0   ;;  %v408_v52 = vmov 0.0  }
   0xe   :  { %v70_v3 = vsel %vm54_vm0, %v69_v1, 0.0  ;;  %v55_v5 = vsel %vm54_vm0, %v53_v4, 0.0  ;;  %50 = vst.msk [vmem:[#allocation7] sm:$0x1] %vm46_vm11, %v408_v52 }
   0xf   :  { %71 = vadd.xlane.f32.xlu0 %v70_v3  ;;  %vm176_vm7 = vcmp.eq.s32.totalorder %v172_v28, %v174_v29  ;;  %47 = vst.msk [vmem:[#allocation4] sm:$0x1] %vm46_vm11, %v408_v52 }
  0x10   :  { %48 = vst.msk [vmem:[#allocation5] sm:$0x1] %vm46_vm11, %v408_v52 }
  0x11   :  { %49 = vst.msk [vmem:[#allocation6] sm:$0x1] %vm46_vm11, %v408_v52 }
  0x15   :  { %v152_v4 = vld [vmem:[#allocation7] sm:$0x1] }
  0x16   :  { %v194_v27 = vld [vmem:[#allocation4] sm:$0x1] }
  0x17   :  { %56 = vadd.xlane.f32.xlu0 %v55_v5  ;;  %v215_v28 = vld [vmem:[#allocation5] sm:$0x1] }
  0x18   :  { %v175_v5 = vld [vmem:[#allocation6] sm:$0x1] }
  0x82   :  { %v72_v6 = vpop.xlane.xlu0 %71 }
  0x83   :  { %v73_v7 = vmax.f32 %v72_v6, 1e-24 }
  0x85   :  { %328 = vrsqrt.f32 %v73_v7  ;;  %vm80_vm2 = vweird.f32 %v73_v7 }
  0x8a   :  { %v57_v8 = vpop.xlane.xlu0 %56 }
  0x8b   :  { %v329_v9 = vpop.eup %328  ;;  %v58_v10 = vmax.f32 %v57_v8, 1e-24 }
  0x8c   :  { %v75_v11 = vmul.f32 %v329_v9, %v73_v7  ;;  %vm81_vm1 = vweird.f32 %v329_v9 }
  0x8d   :  { %330 = vrsqrt.f32 %v58_v10  ;;  %vm82_vm3 = vmor %vm80_vm2, %vm81_vm1  ;;  %vm65_vm5 = vweird.f32 %v58_v10 }
  0x8e   :  { %v76_v12 = vmul.f32 %v329_v9, %v75_v11 }
  0x90   :  { %v77_v13 = vmul.f32 0.5, %v76_v12 }
  0x92   :  { %v78_v14 = vsub.f32 1.5, %v77_v13 }
  0x93   :  { %v331_v15 = vpop.eup %330 }
  0x94   :  { %v60_v16 = vmul.f32 %v331_v15, %v58_v10  ;;  %v79_v17 = vmul.f32 %v329_v9, %v78_v14  ;;  %vm66_vm4 = vweird.f32 %v331_v15 }
  0x95   :  { %vm67_vm6 = vmor %vm65_vm5, %vm66_vm4 }
  0x96   :  { %v61_v18 = vmul.f32 %v331_v15, %v60_v16  ;;  %v83_v19 = vsel %vm82_vm3, %v329_v9, %v79_v17 }
  0x97   :  { %v86_v20 = vmul.f32 %v83_v19, %v52_v0 }
  0x98   :  { %v62_v21 = vmul.f32 0.5, %v61_v18 }
  0x99   :  { %302 = vmatpush.xpose.msk.msra.mxu0 %vm54_vm0, %v86_v20 }
  0x9a   :  { %v63_v22 = vsub.f32 1.5, %v62_v21 }
  0x9c   :  { %v64_v23 = vmul.f32 %v331_v15, %v63_v22 }
  0x9e   :  { %v68_v24 = vsel %vm67_vm6, %v331_v15, %v64_v23 }
  0x9f   :  { %v84_v25 = vmul.f32 14.285714, %v68_v24  ;;  %v409_v24 = vmov 8.0  }
  0xa1   :  { %v85_v26 = vmul.f32 %v84_v25, %v51_v2 }
  0xa3   :  { %303 = vmatmul.msk.f32.vlgmr.msra.gmra.mxu0 %vm54_vm0, %v85_v26 }
 0x120   :  { %v110_v30 = vpop.f32.mrf.mxu0 }
 0x121   :  { %v304_v31 = vadd.f32 -14.285714, %v110_v30  ;;  %v177_v32 = vsel %vm176_vm7, %v110_v30, 0.0  ;;  %v153_v41 = vsel %vm116_vm8, %v110_v30, 0.0 }
 0x122   :  { %v178_v33 = vsel %vm116_vm8, %v177_v32, 0.0 }
 0x123   :  { %v114_v34 = vmul.f32 1.442695, %v304_v31  ;;  %179 = vadd.xlane.f32.xlu2 %v178_v33 }
 0x125   :  { %332 = vpow2.f32 %v114_v34 }
 0x12b   :  { %v333_v35 = vpop.eup %332 }
 0x12c   :  { %v117_v36 = vsel %vm116_vm8, %v333_v35, 0.0 }
 0x12d   :  { %118 = vadd.xlane.f32.xlu1 %v117_v36  ;;  %v120_v37 = vrot.slane %v117_v36, 4 }
 0x12f   :  { %v121_v38 = vadd.f32 %v120_v37, %v117_v36 }
 0x131   :  { %v122_v39 = vrot.slane %v121_v38, 2 }
 0x133   :  { %v123_v40 = vadd.f32 %v122_v39, %v121_v38 }
 0x135   :  { %v124_v42 = vrot.slane %v123_v40, 1  ;;  %154 = vadd.xlane.f32.xlu1 %v153_v41 }
 0x137   :  { %v125_v43 = vadd.f32 %v124_v42, %v123_v40 }
 0x139   :  { %143 = vst.msk [vmem:[#allocation3] sm:$0x1] %vm142_vm9, %v125_v43 }
 0x140   :  { %v216_v44 = vld [vmem:[#allocation3] sm:$0x1] }
 0x141   :  { %334 = vlog2.f32 %v216_v44 }
 0x147   :  { %v335_v45 = vpop.eup %334 }
 0x148   :  { %v218_v46 = vmul.f32 0.6931472, %v335_v45 }
 0x14a   :  { %v220_v47 = vsel %vm142_vm9, %v218_v46, 0.0 }
 0x14b   :  { %221 = vadd.xlane.f32.xlu0 %v220_v47 }
 0x196   :  { %v180_v48 = vpop.xlane.xlu2 %179 }
 0x197   :  { %v181_v49 = vrot.slane %v180_v48, 4 }
 0x199   :  { %v182_v51 = vadd.f32 %v181_v49, %v180_v48 }
 0x19b   :  { %v183_v53 = vrot.slane %v182_v51, 2 }
 0x19d   :  { %v184_v58 = vadd.f32 %v183_v53, %v182_v51 }
 0x19f   :  { %v185_v63 = vrot.slane %v184_v58, 1 }
 0x1a0   :  { %v119_v50 = vpop.xlane.xlu1 %118 }
 0x1a1   :  { %130 = vst.msk [vmem:[#allocation2] sm:$0xff] %vm129_vm10, %v119_v50  ;;  %v186_v3 = vadd.f32 %v185_v63, %v184_v58 }
 0x1a8   :  { %v155_v54 = vpop.xlane.xlu1 %154  ;;  %v195_v55 = vld [vmem:[#allocation2] sm:$0xff] }
 0x1a9   :  { %v156_v56 = vrot.slane %v155_v54, 4  ;;  %336 = vlog2.f32 %v195_v55 }
 0x1aa   :  { %338 = vrcp.f32 %v409_v24 }
 0x1ab   :  { %v157_v57 = vadd.f32 %v156_v56, %v155_v54 }
 0x1ad   :  { %v158_v59 = vrot.slane %v157_v57, 2 }
 0x1af   :  { %v337_v60 = vpop.eup %336  ;;  %v159_v61 = vadd.f32 %v158_v59, %v157_v57 }
 0x1b0   :  { %v197_v62 = vmul.f32 0.6931472, %v337_v60  ;;  %v339_v25 = vpop.eup %338 }
 0x1b1   :  { %v160_v0 = vrot.slane %v159_v61, 1  ;;  %v257_v26 = vmul.f32 8.0, %v339_v25  ;;  %vm261_vm12 = vweird.f32 %v339_v25 }
 0x1b2   :  { %v199_v1 = vsel %vm129_vm10, %v197_v62, 0.0 }
 0x1b3   :  { %200 = vadd.xlane.f32.xlu2 %v199_v1  ;;  %v161_v2 = vadd.f32 %v160_v0, %v159_v61  ;;  %v258_v30 = vsub.f32 1.0, %v257_v26 }
 0x1b5   :  { %305 = vpush %v161_v2  ;;  %v259_v34 = vmul.f32 %v339_v25, %v258_v30 }
 0x1b6   :  { %307 = vpush %v186_v3 }
 0x1b7   :  { %v260_v35 = vadd.f32 %v339_v25, %v259_v34 }
 0x1b9   :  { %v262_v39 = vsel %vm261_vm12, %v339_v25, %v260_v35 }
 0x1be   :  { %v222_v10 = vpop.xlane.xlu0 %221 }
 0x1bf   :  { %v223_v11 = vrot.slane %v222_v10, 4 }
 0x1c1   :  { %v224_v12 = vadd.f32 %v223_v11, %v222_v10 }
 0x1c3   :  { %v225_v13 = vrot.slane %v224_v12, 2 }
 0x1c5   :  { %v226_v17 = vadd.f32 %v225_v13, %v224_v12 }
 0x1c7   :  { %v227_v20 = vrot.slane %v226_v17, 1 }
 0x1c9   :  { %v228_v23 = vadd.f32 %v227_v20, %v226_v17 }
 0x1e6   :  { %s306_s0 = spop %305 }
 0x1e7   :  { %v163_v6 = vstv %s306_s0  ;;  %s308_s1 = spop %307  ;;  %s410_s0 = smov [#allocation13]  }
 0x1e8   :  { %v164_v7 = vadd.f32 %v163_v6, %v152_v4  ;;  %v188_v8 = vstv %s308_s1 }
 0x1e9   :  { %v189_v9 = vadd.f32 %v188_v8, %v175_v5 }
 0x1ea   :  { %166 = vst.msk [vmem:[#allocation7] sm:$0x1] %vm46_vm11, %v164_v7 }
 0x1eb   :  { %190 = vst.msk [vmem:[#allocation6] sm:$0x1] %vm46_vm11, %v189_v9 }
 0x1f1   :  { %v246_v40 = vld [vmem:[#allocation7] sm:$0x1] }
 0x1f2   :  { %v243_v38 = vld [vmem:[#allocation6] sm:$0x1] }
 0x226   :  { %v201_v14 = vpop.xlane.xlu2 %200 }
 0x227   :  { %v202_v15 = vrot.slane %v201_v14, 4 }
 0x229   :  { %v203_v16 = vadd.f32 %v202_v15, %v201_v14 }
 0x22b   :  { %v204_v18 = vrot.slane %v203_v16, 2 }
 0x22d   :  { %v205_v19 = vadd.f32 %v204_v18, %v203_v16 }
 0x22f   :  { %v206_v21 = vrot.slane %v205_v19, 1 }
 0x231   :  { %v207_v22 = vadd.f32 %v206_v21, %v205_v19 }
 0x233   :  { %309 = vpush %v207_v22 }
 0x234   :  { %311 = vpush %v228_v23 }
 0x264   :  { %s310_s19 = spop %309 }
 0x265   :  { %v209_v29 = vstv %s310_s19  ;;  %s312_s20 = spop %311 }
 0x266   :  { %v210_v31 = vadd.f32 %v209_v29, %v194_v27  ;;  %v230_v32 = vstv %s312_s20 }
 0x267   :  { %v231_v33 = vadd.f32 %v230_v32, %v215_v28 }
 0x268   :  { %211 = vst.msk [vmem:[#allocation4] sm:$0x1] %vm46_vm11, %v210_v31 }
 0x269   :  { %232 = vst.msk [vmem:[#allocation5] sm:$0x1] %vm46_vm11, %v231_v33 }
 0x26f   :  { %v235_v36 = vld [vmem:[#allocation4] sm:$0x1] }
 0x270   :  { %313 = vpush %v235_v36  ;;  %v239_v37 = vld [vmem:[#allocation5] sm:$0x1] }
 0x271   :  { %315 = vpush %v239_v37 }
 0x272   :  { %317 = vpush %v243_v38 }
 0x273   :  { %319 = vpush %v246_v40 }
 0x274   :  { %321 = vpush %v262_v39 }
 0x2a1   :  { %s314_s21 = spop %313 }
 0x2a2   :  { %s238_s22 = sadd.f32 114.28571, %s314_s21  ;;  %s316_s23 = spop %315 }
 0x2a3   :  { %s242_s24 = sadd.f32 114.28571, %s316_s23  ;;  %s318_s25 = spop %317 }
 0x2a4   :  { %s251_s26 = smul.f32 8.0, %s238_s22  ;;  %s249_s27 = ssub.f32 %s318_s25, %s238_s22 }
 0x2a5   :  { %s269_s28 = smul.f32 8.0, %s242_s24  ;;  %s267_s29 = ssub.f32 %s318_s25, %s242_s24 }
 0x2a6   :  { %s320_s30 = spop %319  ;;  %s250_s3 = smul.f32 0.8857143, %s249_s27 }
 0x2a7   :  { %s252_s4 = ssub.f32 %s320_s30, %s251_s26  ;;  %s268_s5 = smul.f32 0.8857143, %s267_s29 }
 0x2a8   :  { %s270_s6 = ssub.f32 %s320_s30, %s269_s28  ;;  %s322_s10 = spop %321 }
 0x2a9   :  { %s253_s7 = smul.f32 0.014285714, %s252_s4 }
 0x2aa   :  { %s271_s8 = smul.f32 0.014285714, %s270_s6 }
 0x2ab   :  { %s254_s9 = sadd.f32 %s253_s7, %s250_s3 }
 0x2ac   :  { %s272_s11 = sadd.f32 %s271_s8, %s268_s5 }
 0x2ad   :  { %s255_s12 = ssub.f32 0.0, %s254_s9 }
 0x2ae   :  { %s273_s16 = ssub.f32 0.0, %s272_s11 }
 0x2af   :  { %s264_s17 = smul.f32 %s322_s10, %s255_s12 }
 0x2b0   :  { %s282_s18 = smul.f32 %s322_s10, %s273_s16 }
 0x2b1   :  { %266 = sst [smem:[#allocation13]] %s264_s17 }
 0x2b2   :  { %284 = sst [smem:[#allocation13 + $0x1]] %s282_s18 }
 0x2b3   :  { %293 = dma.smem_to_hbm %s410_s0, 16, %s291_s15, [#allocation10]  }
 0x2b4   :  { %404 = dma.done.wait [#allocation10], 16  }
 0x2b5   :  { %405 = vsyncadd [#allocation10], 4294967280 }
 0x2b6   :  { %298 = sfence }
 0x2b7   :  { %299 = vsyncpa [#allocation9], 1 }
 0x2b8   :  { %300 = vsyncpa [#allocation12], 1 }
 0x2b9   :  { %301 = vsyncpa [#allocation10], 1 }

</bundles_post_ra>
